<compile_context>
chip_gen: v7x
topology: tpu7x:2x2x1
jax: 0.10.0
libtpu: 0.0.40
codegen_flags: <defaults>
</compile_context>

<pallas_src>
import jax
import jax.numpy as jnp
from jax.experimental import pallas as pl
from jax.experimental.pallas import tpu as pltpu

K_CHEB = 4  # ChebConv(..., K=4)


# ----------------------------- Pallas kernel ------------------------------- #

def gcrnn_mlp_kernel(a_ref, g_ref, wfc_ref, bfc_ref, out_ref):
    """Fused GCRNN recurrence + FC + softmax, all in lane-dense flat form.

    h_t(flat) = sigmoid( a[t] + h_{t-1}(flat) @ G ),   h_{-1} = 0
    logits    = b_fc + sum_t h_t(flat) @ W_fc[t]
    out       = softmax(logits, axis=-1)
    """
    dot = lambda a, b: jnp.dot(a, b, preferred_element_type=jnp.float32)

    T = a_ref.shape[0]
    G = g_ref[...]                      # (N*C, N*C) combined ChebB operator
    logits = bfc_ref[...]               # (1, n_cls) accumulator (lane-major)

    # t = 0: hidden state is zero, so ChebB contributes only its bias, which is
    # already folded into a_ref[0] host-side.
    h = jax.nn.sigmoid(a_ref[0])        # (1, N*C)
    logits = logits + dot(h, wfc_ref[0])

    for t in range(1, T):               # static unroll: T is small & fixed
        h = jax.nn.sigmoid(a_ref[t] + dot(h, G))      # single MXU op on the chain
        logits = logits + dot(h, wfc_ref[t])          # FC accumulate, off the chain

    m = jnp.max(logits, axis=-1, keepdims=True)
    e = jnp.exp(logits - m)
    out_ref[...] = e / jnp.sum(e, axis=-1, keepdims=True)


# ------------------------------ Wrapper ------------------------------------ #

def _full_spec(shape):
    nd = len(shape)
    return pl.BlockSpec(shape, lambda i, _nd=nd: (0,) * _nd)


@jax.jit
def gcrnn_mlp_forward(L, x_nt, wa, ba, wb, bb, w_fc, b_fc):
    """Full GCRNNMLP forward. x_nt: (N, T) node signals (inChannels = 1)."""
    N, T = x_nt.shape
    K, _, C = wa.shape
    n_cls = w_fc.shape[0]
    NC = N * C
    f32 = jnp.float32

    # --- Chebyshev operators of the shift, hoisted out of the kernel ---------
    I_n = jnp.eye(N, dtype=f32)
    M1 = L
    M2 = 2.0 * (L @ L) - I_n            # T_2(L)
    M3 = 2.0 * (L @ M2) - L             # T_3(L)
    Ms = (I_n, M1, M2, M3)

    # --- ChebA path (linear in x, independent of the recurrence) -> XLA ------
    # a_all[t] = sum_k T_k(L) x_t wa_k + ba + bb  (ChebB bias folded in too)
    TX = jnp.stack([Mk @ x_nt for Mk in Ms], axis=0)            # (K, N, T)
    a_all = jnp.einsum('knt,kc->tnc', TX, wa[:, 0, :]) \
        + (ba + bb).reshape(1, 1, C)                            # (T, N, C)
    a_flat = a_all.reshape(T, 1, NC)                            # row-major (n,c)

    # --- ChebB recurrence folded into one (N*C, N*C) operator ----------------
    # sum_k M_k h W_k  <=>  h_flat @ G  with  G = sum_k kron(M_k^T, W_k)
    G = (jnp.kron(I_n, wb[0]) + jnp.kron(M1.T, wb[1])
         + jnp.kron(M2.T, wb[2]) + jnp.kron(M3.T, wb[3]))       # (N*C, N*C)

    # --- FC weight repack: PyTorch H.view(-1) order is (node, time, chan),
    #     i.e. col = n*T*C + t*C + c  ->  per-step (N*C, n_cls) in (n,c) order.
    wfc_r = jnp.transpose(w_fc.reshape(n_cls, N, T, C),
                          (2, 1, 3, 0)).reshape(T, NC, n_cls)   # (T, N*C, n_cls)
    bfc_row = b_fc.reshape(1, n_cls)

    out = pl.pallas_call(
        gcrnn_mlp_kernel,
        out_shape=jax.ShapeDtypeStruct((1, n_cls), f32),
        grid=(1,),
        in_specs=[_full_spec(a_flat.shape), _full_spec(G.shape),
                  _full_spec(wfc_r.shape), _full_spec(bfc_row.shape)],
        out_specs=_full_spec((1, n_cls)),
        compiler_params=pltpu.CompilerParams(dimension_semantics=("arbitrary",)),
    )(a_flat, G, wfc_r, bfc_row)
    return out[0]


# --------------------------- Pure-JAX reference ----------------------------- #

def ref_forward(L, x_nt, wa, ba, wb, bb, w_fc, b_fc):
    N, T = x_nt.shape
    C = wb.shape[-1]

    def cheb(x, w, b):
        tx0 = x
        out = tx0 @ w[0]
        tx1 = L @ tx0
        out = out + tx1 @ w[1]
        tx2 = 2.0 * (L @ tx1) - tx0
        out = out + tx2 @ w[2]
        tx3 = 2.0 * (L @ tx2) - tx1
        out = out + tx3 @ w[3]
        return out + b

    h = jnp.zeros((N, C), jnp.float32)
    cols = []
    for t in range(T):
        xt = x_nt[:, t:t + 1]
        h = jax.nn.sigmoid(cheb(xt, wa, ba) + cheb(h, wb, bb))
        cols.append(h)
    H = jnp.concatenate(cols, axis=1)               # (N, T*C)
    logits = w_fc @ H.reshape(-1) + b_fc
    return jax.nn.softmax(logits)


# ---------------------------------- Main ------------------------------------ #

if __name__ == "__main__":
    # Shapes consistent with the module: inChannels=1 (forward uses
    # x.select(-1, t).view(N, 1)), hiddenChannels=8, numNodes=16, T=8, classes=4.
    N, T, C, NUM_CLASSES = 16, 8, 8, 4

    key = jax.random.PRNGKey(0)
    ks = jax.random.split(key, 8)

    # Graph: random symmetric positive-weight adjacency, no self loops ->
    # L_hat = -D^{-1/2} A D^{-1/2}  (PyG ChebConv sym norm, lambda_max = 2.0).
    adj = jax.random.uniform(ks[0], (N, N), jnp.float32, minval=0.1, maxval=1.0)
    adj = 0.5 * (adj + adj.T) * (1.0 - jnp.eye(N, dtype=jnp.float32))
    d_inv_sqrt = 1.0 / jnp.sqrt(adj.sum(axis=1))
    L_hat = -(d_inv_sqrt[:, None] * adj * d_inv_sqrt[None, :])

    # Deterministic synthetic parameters (shapes match the module's __init__).
    wa = 0.3 * jax.random.normal(ks[1], (K_CHEB, 1, C), jnp.float32)   # ChebConv A
    ba = 0.1 * jax.random.normal(ks[2], (1, C), jnp.float32)
    wb = 0.3 * jax.random.normal(ks[3], (K_CHEB, C, C), jnp.float32)   # ChebConv B
    bb = 0.1 * jax.random.normal(ks[4], (1, C), jnp.float32)
    w_fc = 0.05 * jax.random.normal(ks[5], (NUM_CLASSES, C * T * N), jnp.float32)
    b_fc = 0.1 * jax.random.normal(ks[6], (NUM_CLASSES,), jnp.float32)

    # Input node signals x: (numNodes, T).
    x = jax.random.normal(ks[7], (N, T), jnp.float32)

    y = gcrnn_mlp_forward(L_hat, x, wa, ba, wb, bb, w_fc, b_fc)
    y = jax.block_until_ready(y)

    y_ref = ref_forward(L_hat, x, wa, ba, wb, bb, w_fc, b_fc)
    assert y.shape == (NUM_CLASSES,)
    assert jnp.allclose(y, y_ref, rtol=5e-3, atol=5e-3), (y, y_ref)
    assert jnp.allclose(jnp.sum(y), 1.0, atol=1e-4)

    print("KERNEL_OK")
</pallas_src>

<mosaic_0001>
module attributes {stable_mosaic.version = 11 : i64} {
  func.func @gcrnn_mlp_kernel(%arg0: i32, %arg1: memref<8x1x128xf32, #tpu.memory_space<vmem>>, %arg2: memref<128x128xf32, #tpu.memory_space<vmem>>, %arg3: memref<8x128x4xf32, #tpu.memory_space<vmem>>, %arg4: memref<1x4xf32, #tpu.memory_space<vmem>>, %arg5: memref<1x4xf32, #tpu.memory_space<vmem>>) attributes {dimension_semantics = [#tpu.dimension_semantics<arbitrary>], iteration_bounds = array<i64: 1>, scalar_prefetch = 0 : i64, scratch_operands = 0 : i64, tpu.core_type = #tpu.core_type<tc>, window_params = [{pipeline_mode = #tpu.pipeline_mode<synchronous>, transform_indices = @transform_0, window_bounds = array<i64: 8, 1, 128>}, {pipeline_mode = #tpu.pipeline_mode<synchronous>, transform_indices = @transform_1, window_bounds = array<i64: 128, 128>}, {pipeline_mode = #tpu.pipeline_mode<synchronous>, transform_indices = @transform_2, window_bounds = array<i64: 8, 128, 4>}, {pipeline_mode = #tpu.pipeline_mode<synchronous>, transform_indices = @transform_3, window_bounds = array<i64: 1, 4>}, {pipeline_mode = #tpu.pipeline_mode<synchronous>, transform_indices = @transform_4, window_bounds = array<i64: 1, 4>}]} {
    %c0 = arith.constant 0 : index
    %c0_0 = arith.constant 0 : index
    %0 = vector.load %arg2[%c0, %c0_0] : memref<128x128xf32, #tpu.memory_space<vmem>>, vector<128x128xf32>
    %c0_1 = arith.constant 0 : index
    %c0_2 = arith.constant 0 : index
    %1 = vector.load %arg4[%c0_1, %c0_2] : memref<1x4xf32, #tpu.memory_space<vmem>>, vector<1x4xf32>
    %c0_3 = arith.constant 0 : index
    %c0_4 = arith.constant 0 : index
    %c0_5 = arith.constant 0 : index
    %2 = vector.load %arg1[%c0_3, %c0_4, %c0_5] : memref<8x1x128xf32, #tpu.memory_space<vmem>>, vector<1x1x128xf32>
    %3 = vector.shape_cast %2 : vector<1x1x128xf32> to vector<1x128xf32>
    %4 = arith.negf %3 : vector<1x128xf32>
    %5 = math.exp %4 : vector<1x128xf32>
    %cst = arith.constant 1.000000e+00 : f32
    %6 = vector.broadcast %cst : f32 to vector<1x128xf32>
    %7 = arith.addf %6, %5 : vector<1x128xf32>
    %8 = arith.divf %6, %7 : vector<1x128xf32>
    %c0_6 = arith.constant 0 : index
    %c0_7 = arith.constant 0 : index
    %c0_8 = arith.constant 0 : index
    %9 = vector.load %arg3[%c0_6, %c0_7, %c0_8] : memref<8x128x4xf32, #tpu.memory_space<vmem>>, vector<1x128x4xf32>
    %10 = vector.shape_cast %9 : vector<1x128x4xf32> to vector<128x4xf32>
    %cst_9 = arith.constant dense<0.000000e+00> : vector<1x4xf32>
    %11 = tpu.matmul %8, %10, %cst_9 {dimension_numbers = #tpu.dot_dimension_numbers<[1], [0], [0], [1], [0, 0, 1, 1], [], []>} : vector<1x128xf32>, vector<128x4xf32>, vector<1x4xf32> -> vector<1x4xf32>
    %12 = arith.addf %1, %11 : vector<1x4xf32>
    %c1 = arith.constant 1 : index
    %c0_10 = arith.constant 0 : index
    %c0_11 = arith.constant 0 : index
    %13 = vector.load %arg1[%c1, %c0_10, %c0_11] : memref<8x1x128xf32, #tpu.memory_space<vmem>>, vector<1x1x128xf32>
    %14 = vector.shape_cast %13 : vector<1x1x128xf32> to vector<1x128xf32>
    %cst_12 = arith.constant dense<0.000000e+00> : vector<1x128xf32>
    %15 = tpu.matmul %8, %0, %cst_12 {dimension_numbers = #tpu.dot_dimension_numbers<[1], [0], [0], [1], [0, 0, 1, 1], [], []>} : vector<1x128xf32>, vector<128x128xf32>, vector<1x128xf32> -> vector<1x128xf32>
    %16 = arith.addf %14, %15 : vector<1x128xf32>
    %17 = arith.negf %16 : vector<1x128xf32>
    %18 = math.exp %17 : vector<1x128xf32>
    %cst_13 = arith.constant 1.000000e+00 : f32
    %19 = vector.broadcast %cst_13 : f32 to vector<1x128xf32>
    %20 = arith.addf %19, %18 : vector<1x128xf32>
    %21 = arith.divf %19, %20 : vector<1x128xf32>
    %c1_14 = arith.constant 1 : index
    %c0_15 = arith.constant 0 : index
    %c0_16 = arith.constant 0 : index
    %22 = vector.load %arg3[%c1_14, %c0_15, %c0_16] : memref<8x128x4xf32, #tpu.memory_space<vmem>>, vector<1x128x4xf32>
    %23 = vector.shape_cast %22 : vector<1x128x4xf32> to vector<128x4xf32>
    %cst_17 = arith.constant dense<0.000000e+00> : vector<1x4xf32>
    %24 = tpu.matmul %21, %23, %cst_17 {dimension_numbers = #tpu.dot_dimension_numbers<[1], [0], [0], [1], [0, 0, 1, 1], [], []>} : vector<1x128xf32>, vector<128x4xf32>, vector<1x4xf32> -> vector<1x4xf32>
    %25 = arith.addf %12, %24 : vector<1x4xf32>
    %c2 = arith.constant 2 : index
    %c0_18 = arith.constant 0 : index
    %c0_19 = arith.constant 0 : index
    %26 = vector.load %arg1[%c2, %c0_18, %c0_19] : memref<8x1x128xf32, #tpu.memory_space<vmem>>, vector<1x1x128xf32>
    %27 = vector.shape_cast %26 : vector<1x1x128xf32> to vector<1x128xf32>
    %cst_20 = arith.constant dense<0.000000e+00> : vector<1x128xf32>
    %28 = tpu.matmul %21, %0, %cst_20 {dimension_numbers = #tpu.dot_dimension_numbers<[1], [0], [0], [1], [0, 0, 1, 1], [], []>} : vector<1x128xf32>, vector<128x128xf32>, vector<1x128xf32> -> vector<1x128xf32>
    %29 = arith.addf %27, %28 : vector<1x128xf32>
    %30 = arith.negf %29 : vector<1x128xf32>
    %31 = math.exp %30 : vector<1x128xf32>
    %cst_21 = arith.constant 1.000000e+00 : f32
    %32 = vector.broadcast %cst_21 : f32 to vector<1x128xf32>
    %33 = arith.addf %32, %31 : vector<1x128xf32>
    %34 = arith.divf %32, %33 : vector<1x128xf32>
    %c2_22 = arith.constant 2 : index
    %c0_23 = arith.constant 0 : index
    %c0_24 = arith.constant 0 : index
    %35 = vector.load %arg3[%c2_22, %c0_23, %c0_24] : memref<8x128x4xf32, #tpu.memory_space<vmem>>, vector<1x128x4xf32>
    %36 = vector.shape_cast %35 : vector<1x128x4xf32> to vector<128x4xf32>
    %cst_25 = arith.constant dense<0.000000e+00> : vector<1x4xf32>
    %37 = tpu.matmul %34, %36, %cst_25 {dimension_numbers = #tpu.dot_dimension_numbers<[1], [0], [0], [1], [0, 0, 1, 1], [], []>} : vector<1x128xf32>, vector<128x4xf32>, vector<1x4xf32> -> vector<1x4xf32>
    %38 = arith.addf %25, %37 : vector<1x4xf32>
    %c3 = arith.constant 3 : index
    %c0_26 = arith.constant 0 : index
    %c0_27 = arith.constant 0 : index
    %39 = vector.load %arg1[%c3, %c0_26, %c0_27] : memref<8x1x128xf32, #tpu.memory_space<vmem>>, vector<1x1x128xf32>
    %40 = vector.shape_cast %39 : vector<1x1x128xf32> to vector<1x128xf32>
    %cst_28 = arith.constant dense<0.000000e+00> : vector<1x128xf32>
    %41 = tpu.matmul %34, %0, %cst_28 {dimension_numbers = #tpu.dot_dimension_numbers<[1], [0], [0], [1], [0, 0, 1, 1], [], []>} : vector<1x128xf32>, vector<128x128xf32>, vector<1x128xf32> -> vector<1x128xf32>
    %42 = arith.addf %40, %41 : vector<1x128xf32>
    %43 = arith.negf %42 : vector<1x128xf32>
    %44 = math.exp %43 : vector<1x128xf32>
    %cst_29 = arith.constant 1.000000e+00 : f32
    %45 = vector.broadcast %cst_29 : f32 to vector<1x128xf32>
    %46 = arith.addf %45, %44 : vector<1x128xf32>
    %47 = arith.divf %45, %46 : vector<1x128xf32>
    %c3_30 = arith.constant 3 : index
    %c0_31 = arith.constant 0 : index
    %c0_32 = arith.constant 0 : index
    %48 = vector.load %arg3[%c3_30, %c0_31, %c0_32] : memref<8x128x4xf32, #tpu.memory_space<vmem>>, vector<1x128x4xf32>
    %49 = vector.shape_cast %48 : vector<1x128x4xf32> to vector<128x4xf32>
    %cst_33 = arith.constant dense<0.000000e+00> : vector<1x4xf32>
    %50 = tpu.matmul %47, %49, %cst_33 {dimension_numbers = #tpu.dot_dimension_numbers<[1], [0], [0], [1], [0, 0, 1, 1], [], []>} : vector<1x128xf32>, vector<128x4xf32>, vector<1x4xf32> -> vector<1x4xf32>
    %51 = arith.addf %38, %50 : vector<1x4xf32>
    %c4 = arith.constant 4 : index
    %c0_34 = arith.constant 0 : index
    %c0_35 = arith.constant 0 : index
    %52 = vector.load %arg1[%c4, %c0_34, %c0_35] : memref<8x1x128xf32, #tpu.memory_space<vmem>>, vector<1x1x128xf32>
    %53 = vector.shape_cast %52 : vector<1x1x128xf32> to vector<1x128xf32>
    %cst_36 = arith.constant dense<0.000000e+00> : vector<1x128xf32>
    %54 = tpu.matmul %47, %0, %cst_36 {dimension_numbers = #tpu.dot_dimension_numbers<[1], [0], [0], [1], [0, 0, 1, 1], [], []>} : vector<1x128xf32>, vector<128x128xf32>, vector<1x128xf32> -> vector<1x128xf32>
    %55 = arith.addf %53, %54 : vector<1x128xf32>
    %56 = arith.negf %55 : vector<1x128xf32>
    %57 = math.exp %56 : vector<1x128xf32>
    %cst_37 = arith.constant 1.000000e+00 : f32
    %58 = vector.broadcast %cst_37 : f32 to vector<1x128xf32>
    %59 = arith.addf %58, %57 : vector<1x128xf32>
    %60 = arith.divf %58, %59 : vector<1x128xf32>
    %c4_38 = arith.constant 4 : index
    %c0_39 = arith.constant 0 : index
    %c0_40 = arith.constant 0 : index
    %61 = vector.load %arg3[%c4_38, %c0_39, %c0_40] : memref<8x128x4xf32, #tpu.memory_space<vmem>>, vector<1x128x4xf32>
    %62 = vector.shape_cast %61 : vector<1x128x4xf32> to vector<128x4xf32>
    %cst_41 = arith.constant dense<0.000000e+00> : vector<1x4xf32>
    %63 = tpu.matmul %60, %62, %cst_41 {dimension_numbers = #tpu.dot_dimension_numbers<[1], [0], [0], [1], [0, 0, 1, 1], [], []>} : vector<1x128xf32>, vector<128x4xf32>, vector<1x4xf32> -> vector<1x4xf32>
    %64 = arith.addf %51, %63 : vector<1x4xf32>
    %c5 = arith.constant 5 : index
    %c0_42 = arith.constant 0 : index
    %c0_43 = arith.constant 0 : index
    %65 = vector.load %arg1[%c5, %c0_42, %c0_43] : memref<8x1x128xf32, #tpu.memory_space<vmem>>, vector<1x1x128xf32>
    %66 = vector.shape_cast %65 : vector<1x1x128xf32> to vector<1x128xf32>
    %cst_44 = arith.constant dense<0.000000e+00> : vector<1x128xf32>
    %67 = tpu.matmul %60, %0, %cst_44 {dimension_numbers = #tpu.dot_dimension_numbers<[1], [0], [0], [1], [0, 0, 1, 1], [], []>} : vector<1x128xf32>, vector<128x128xf32>, vector<1x128xf32> -> vector<1x128xf32>
    %68 = arith.addf %66, %67 : vector<1x128xf32>
    %69 = arith.negf %68 : vector<1x128xf32>
    %70 = math.exp %69 : vector<1x128xf32>
    %cst_45 = arith.constant 1.000000e+00 : f32
    %71 = vector.broadcast %cst_45 : f32 to vector<1x128xf32>
    %72 = arith.addf %71, %70 : vector<1x128xf32>
    %73 = arith.divf %71, %72 : vector<1x128xf32>
    %c5_46 = arith.constant 5 : index
    %c0_47 = arith.constant 0 : index
    %c0_48 = arith.constant 0 : index
    %74 = vector.load %arg3[%c5_46, %c0_47, %c0_48] : memref<8x128x4xf32, #tpu.memory_space<vmem>>, vector<1x128x4xf32>
    %75 = vector.shape_cast %74 : vector<1x128x4xf32> to vector<128x4xf32>
    %cst_49 = arith.constant dense<0.000000e+00> : vector<1x4xf32>
    %76 = tpu.matmul %73, %75, %cst_49 {dimension_numbers = #tpu.dot_dimension_numbers<[1], [0], [0], [1], [0, 0, 1, 1], [], []>} : vector<1x128xf32>, vector<128x4xf32>, vector<1x4xf32> -> vector<1x4xf32>
    %77 = arith.addf %64, %76 : vector<1x4xf32>
    %c6 = arith.constant 6 : index
    %c0_50 = arith.constant 0 : index
    %c0_51 = arith.constant 0 : index
    %78 = vector.load %arg1[%c6, %c0_50, %c0_51] : memref<8x1x128xf32, #tpu.memory_space<vmem>>, vector<1x1x128xf32>
    %79 = vector.shape_cast %78 : vector<1x1x128xf32> to vector<1x128xf32>
    %cst_52 = arith.constant dense<0.000000e+00> : vector<1x128xf32>
    %80 = tpu.matmul %73, %0, %cst_52 {dimension_numbers = #tpu.dot_dimension_numbers<[1], [0], [0], [1], [0, 0, 1, 1], [], []>} : vector<1x128xf32>, vector<128x128xf32>, vector<1x128xf32> -> vector<1x128xf32>
    %81 = arith.addf %79, %80 : vector<1x128xf32>
    %82 = arith.negf %81 : vector<1x128xf32>
    %83 = math.exp %82 : vector<1x128xf32>
    %cst_53 = arith.constant 1.000000e+00 : f32
    %84 = vector.broadcast %cst_53 : f32 to vector<1x128xf32>
    %85 = arith.addf %84, %83 : vector<1x128xf32>
    %86 = arith.divf %84, %85 : vector<1x128xf32>
    %c6_54 = arith.constant 6 : index
    %c0_55 = arith.constant 0 : index
    %c0_56 = arith.constant 0 : index
    %87 = vector.load %arg3[%c6_54, %c0_55, %c0_56] : memref<8x128x4xf32, #tpu.memory_space<vmem>>, vector<1x128x4xf32>
    %88 = vector.shape_cast %87 : vector<1x128x4xf32> to vector<128x4xf32>
    %cst_57 = arith.constant dense<0.000000e+00> : vector<1x4xf32>
    %89 = tpu.matmul %86, %88, %cst_57 {dimension_numbers = #tpu.dot_dimension_numbers<[1], [0], [0], [1], [0, 0, 1, 1], [], []>} : vector<1x128xf32>, vector<128x4xf32>, vector<1x4xf32> -> vector<1x4xf32>
    %90 = arith.addf %77, %89 : vector<1x4xf32>
    %c7 = arith.constant 7 : index
    %c0_58 = arith.constant 0 : index
    %c0_59 = arith.constant 0 : index
    %91 = vector.load %arg1[%c7, %c0_58, %c0_59] : memref<8x1x128xf32, #tpu.memory_space<vmem>>, vector<1x1x128xf32>
    %92 = vector.shape_cast %91 : vector<1x1x128xf32> to vector<1x128xf32>
    %cst_60 = arith.constant dense<0.000000e+00> : vector<1x128xf32>
    %93 = tpu.matmul %86, %0, %cst_60 {dimension_numbers = #tpu.dot_dimension_numbers<[1], [0], [0], [1], [0, 0, 1, 1], [], []>} : vector<1x128xf32>, vector<128x128xf32>, vector<1x128xf32> -> vector<1x128xf32>
    %94 = arith.addf %92, %93 : vector<1x128xf32>
    %95 = arith.negf %94 : vector<1x128xf32>
    %96 = math.exp %95 : vector<1x128xf32>
    %cst_61 = arith.constant 1.000000e+00 : f32
    %97 = vector.broadcast %cst_61 : f32 to vector<1x128xf32>
    %98 = arith.addf %97, %96 : vector<1x128xf32>
    %99 = arith.divf %97, %98 : vector<1x128xf32>
    %c7_62 = arith.constant 7 : index
    %c0_63 = arith.constant 0 : index
    %c0_64 = arith.constant 0 : index
    %100 = vector.load %arg3[%c7_62, %c0_63, %c0_64] : memref<8x128x4xf32, #tpu.memory_space<vmem>>, vector<1x128x4xf32>
    %101 = vector.shape_cast %100 : vector<1x128x4xf32> to vector<128x4xf32>
    %cst_65 = arith.constant dense<0.000000e+00> : vector<1x4xf32>
    %102 = tpu.matmul %99, %101, %cst_65 {dimension_numbers = #tpu.dot_dimension_numbers<[1], [0], [0], [1], [0, 0, 1, 1], [], []>} : vector<1x128xf32>, vector<128x4xf32>, vector<1x4xf32> -> vector<1x4xf32>
    %103 = arith.addf %90, %102 : vector<1x4xf32>
    %cst_66 = arith.constant dense<0xFF800000> : vector<1xf32>
    %104 = vector.multi_reduction <maximumf>, %103, %cst_66 [1] : vector<1x4xf32> to vector<1xf32>
    %105 = vector.shape_cast %104 : vector<1xf32> to vector<1x1xf32>
    %106 = vector.broadcast %105 : vector<1x1xf32> to vector<1x4xf32>
    %107 = arith.subf %103, %106 : vector<1x4xf32>
    %108 = math.exp %107 : vector<1x4xf32>
    %cst_67 = arith.constant dense<0.000000e+00> : vector<1xf32>
    %109 = vector.multi_reduction <add>, %108, %cst_67 [1] : vector<1x4xf32> to vector<1xf32>
    %110 = vector.shape_cast %109 : vector<1xf32> to vector<1x1xf32>
    %111 = vector.broadcast %110 : vector<1x1xf32> to vector<1x4xf32>
    %112 = arith.divf %108, %111 : vector<1x4xf32>
    %c0_68 = arith.constant 0 : index
    %c0_69 = arith.constant 0 : index
    %113 = vector.load %arg5[%c0_68, %c0_69] : memref<1x4xf32, #tpu.memory_space<vmem>>, vector<1x4xf32>
    tpu.vector_store %arg5[%c0_68, %c0_69], %112 {strides = array<i32>} : memref<1x4xf32, #tpu.memory_space<vmem>>, vector<1x4xf32>,
    return
  }
  func.func @transform_0(%arg0: i32) -> (i32, i32, i32) {
    %c0_i32 = arith.constant 0 : i32
    %c0_i32_0 = arith.constant 0 : i32
    %c0_i32_1 = arith.constant 0 : i32
    %c0_i32_2 = arith.constant 0 : i32
    return %c0_i32, %c0_i32_0, %c0_i32_1 : i32, i32, i32
  }
  func.func @transform_1(%arg0: i32) -> (i32, i32) {
    %c0_i32 = arith.constant 0 : i32
    %c0_i32_0 = arith.constant 0 : i32
    %c0_i32_1 = arith.constant 0 : i32
    return %c0_i32, %c0_i32_0 : i32, i32
  }
  func.func @transform_2(%arg0: i32) -> (i32, i32, i32) {
    %c0_i32 = arith.constant 0 : i32
    %c0_i32_0 = arith.constant 0 : i32
    %c0_i32_1 = arith.constant 0 : i32
    %c0_i32_2 = arith.constant 0 : i32
    return %c0_i32, %c0_i32_0, %c0_i32_1 : i32, i32, i32
  }
  func.func @transform_3(%arg0: i32) -> (i32, i32) {
    %c0_i32 = arith.constant 0 : i32
    %c0_i32_0 = arith.constant 0 : i32
    %c0_i32_1 = arith.constant 0 : i32
    return %c0_i32, %c0_i32_0 : i32, i32
  }
  func.func @transform_4(%arg0: i32) -> (i32, i32) {
    %c0_i32 = arith.constant 0 : i32
    %c0_i32_0 = arith.constant 0 : i32
    %c0_i32_1 = arith.constant 0 : i32
    return %c0_i32, %c0_i32_0 : i32, i32
  }
}

</mosaic_0001>

<bundles_post_ra>
// kernel: gcrnn_mlp_forward.1
= control target key start
LH: loop header
LB: loop body
LE: loop exit
PB: predicated region body
PF: predicated region fallthrough
CT: control target
= control target key end

     0   :  { %v2671_v3 = vmov 0.0|0.0   ;;  %vm2672_vm0 = vmmov 0   ;;  %v2673_v6 = vmov 0.0   ;;  %s3396_s0 = inlined_call_operand.vmem [shape: f32[8,1,128], index: 0, kind: input, shape index: {}]   ;;  %s3397_s1 = inlined_call_operand.vmem [shape: f32[128,128], index: 1, kind: input, shape index: {}]   ;;  %s3398_s2 = inlined_call_operand.vmem [shape: f32[8,128,4], index: 2, kind: input, shape index: {}]   ;;  %s3399_s3 = inlined_call_operand.vmem [shape: f32[1,4], index: 3, kind: input, shape index: {}]   ;;  %s3400_s4 = inlined_call_operand.hbm [shape: f32[1,4], index: 4, kind: output, shape index: {}]  }
   0x1   :  { %v18_v0 = vld [vmem:[%s3397_s1] sm:$0xff]  ;;  %v19_v1 = vld [vmem:[%s3397_s1 + $0x8] sm:$0xff]  ;;  %v20_v2 = vld [vmem:[%s3397_s1 + $0x10] sm:$0xff]  ;;  %2256 = vmatprep.subr.bf16.mxu1 %v2671_v3  ;;  %1774 = vmatprep.mubr.msk.f32.mxu1 %vm2672_vm0, %v2673_v6 }
   0x2   :  { %v2710_v4 = vpack.c.bf16 %v19_v1, %v18_v0  ;;  %v21_v5 = vld [vmem:[%s3397_s1 + $0x18] sm:$0xff]  ;;  %2232 = vmatprep.subr.bf16.mxu0 %v2671_v3  ;;  %1739 = vmatprep.mubr.msk.f32.mxu0 %vm2672_vm0, %v2673_v6  ;;  %v22_v8 = vld [vmem:[%s3397_s1 + $0x20] sm:$0xff]  ;;  %v23_v9 = vld [vmem:[%s3397_s1 + $0x28] sm:$0xff] }
   0x3   :  { %v2721_v7 = vpack.c.bf16 %v21_v5, %v20_v2  ;;  %v35_v10 = vld [vmem:[%s3396_s0] sm:$0x1]  ;;  %v43_v13 = vld [vmem:[%s3398_s2 + $0x8] sm:$0xff]  ;;  %v44_v14 = vld [vmem:[%s3398_s2 + $0x10] sm:$0xff]  ;;  %v2746_v16 = vpack.c.bf16 %v23_v9, %v22_v8 }
   0x4   :  { %2258 = vmatpush3.bf16.msra.mxu1 %v2710_v4  ;;  %v42_v11 = vld [vmem:[%s3398_s2] sm:$0xff]  ;;  %v1325_v12 = vmul.f32 -1.442695, %v35_v10  ;;  %v45_v15 = vld [vmem:[%s3398_s2 + $0x18] sm:$0xff]  ;;  %v24_v18 = vld [vmem:[%s3397_s1 + $0x30] sm:$0xff] }
   0x5   :  { %2259 = vmatprep.subr.bf16.mxu1 %v2671_v3  ;;  %v2233_v17 = vpack.c.bf16 %v43_v13, %v42_v11  ;;  %v25_v19 = vld [vmem:[%s3397_s1 + $0x38] sm:$0xff]  ;;  %v2236_v20 = vpack.c.bf16 %v45_v15, %v44_v14  ;;  %v46_v21 = vld [vmem:[%s3398_s2 + $0x20] sm:$0xff]  ;;  %v47_v22 = vld [vmem:[%s3398_s2 + $0x28] sm:$0xff] }
   0x6   :  { %2611 = vpow2.f32 %v1325_v12  ;;  %v2763_v23 = vpack.c.bf16 %v25_v19, %v24_v18  ;;  %v26_v24 = vld [vmem:[%s3397_s1 + $0x40] sm:$0xff]  ;;  %v27_v25 = vld [vmem:[%s3397_s1 + $0x48] sm:$0xff] }
   0x7   :  { %2234 = vmatpush3.bf16.msra.mxu0 %v2233_v17 }
   0x8   :  { %2261 = vmatpush3.bf16.msra.mxu1 %v2721_v7  ;;  %2235 = vmatprep.subr.bf16.mxu0 %v2671_v3 }
   0x9   :  { %2262 = vmatprep.subr.bf16.mxu1 %v2671_v3 }
   0xc   :  { %2264 = vmatpush3.bf16.msra.mxu1 %v2746_v16 }
   0xd   :  { %2265 = vmatprep.subr.bf16.mxu1 %v2671_v3 }
   0xe   :  { %9 = vsyncpa [#allocation3], 0  ;;  %2237 = vmatpush3.bf16.msra.mxu0 %v2236_v20  ;;  %v2239_v26 = vpack.c.bf16 %v47_v22, %v46_v21  ;;  %v48_v27 = vld [vmem:[%s3398_s2 + $0x30] sm:$0xff]  ;;  %v49_v28 = vld [vmem:[%s3398_s2 + $0x38] sm:$0xff]  ;;  %v2780_v29 = vpack.c.bf16 %v27_v25, %v26_v24  ;;  %vm1298_vm1 = vcmask 24576  }
   0xf   :  { %2238 = vmatprep.subr.bf16.mxu0 %v2671_v3  ;;  %v28_v30 = vld [vmem:[%s3397_s1 + $0x50] sm:$0xff]  ;;  %v29_v31 = vld [vmem:[%s3397_s1 + $0x58] sm:$0xff]  ;;  %v2242_v32 = vpack.c.bf16 %v49_v28, %v48_v27  ;;  %v50_v34 = vld [vmem:[%s3398_s2 + $0x40] sm:$0xff] }
  0x10   :  { %2267 = vmatpush3.bf16.msra.mxu1 %v2763_v23  ;;  %v2612_v33 = vpop.eup %2611  ;;  %v51_v35 = vld [vmem:[%s3398_s2 + $0x48] sm:$0xff]  ;;  %v2797_v36 = vpack.c.bf16 %v29_v31, %v28_v30  ;;  %v30_v38 = vld [vmem:[%s3397_s1 + $0x60] sm:$0xff]  ;;  %v52_v41 = vld [vmem:[%s3398_s2 + $0x50] sm:$0xff] }
  0x11   :  { %2268 = vmatprep.subr.bf16.mxu1 %v2671_v3  ;;  %v39_v37 = vadd.f32 1.0, %v2612_v33  ;;  %v31_v39 = vld [vmem:[%s3397_s1 + $0x68] sm:$0xff]  ;;  %v2245_v40 = vpack.c.bf16 %v51_v35, %v50_v34  ;;  %v53_v42 = vld [vmem:[%s3398_s2 + $0x58] sm:$0xff]  ;;  %v32_v44 = vld [vmem:[%s3397_s1 + $0x70] sm:$0xff] }
  0x12   :  { %2240 = vmatpush3.bf16.msra.mxu0 %v2239_v26  ;;  %v2814_v43 = vpack.c.bf16 %v31_v39, %v30_v38  ;;  %v33_v45 = vld [vmem:[%s3397_s1 + $0x78] sm:$0xff]  ;;  %v2248_v46 = vpack.c.bf16 %v53_v42, %v52_v41  ;;  %v54_v47 = vld [vmem:[%s3398_s2 + $0x60] sm:$0xff]  ;;  %v55_v48 = vld [vmem:[%s3398_s2 + $0x68] sm:$0xff] }
  0x13   :  { %2241 = vmatprep.subr.bf16.mxu0 %v2671_v3  ;;  %2613 = vrcp.f32 %v39_v37  ;;  %v2831_v49 = vpack.c.bf16 %v33_v45, %v32_v44  ;;  %v2251_v50 = vpack.c.bf16 %v55_v48, %v54_v47  ;;  %v56_v51 = vld [vmem:[%s3398_s2 + $0x70] sm:$0xff]  ;;  %v57_v52 = vld [vmem:[%s3398_s2 + $0x78] sm:$0xff]  ;;  %v1328_v55 = vld [vmem:[%s3398_s2 + $0x80] sm:$0xff] }
  0x14   :  { %2270 = vmatpush3.bf16.msra.mxu1 %v2780_v29  ;;  %v2254_v54 = vpack.c.bf16 %v57_v52, %v56_v51  ;;  %v1329_v56 = vld [vmem:[%s3398_s2 + $0x88] sm:$0xff]  ;;  %v1330_v58 = vld [vmem:[%s3398_s2 + $0x90] sm:$0xff]  ;;  %v1331_v59 = vld [vmem:[%s3398_s2 + $0x98] sm:$0xff] }
  0x15   :  { %2271 = vmatprep.subr.bf16.mxu1 %v2671_v3  ;;  %v2281_v57 = vpack.c.bf16 %v1329_v56, %v1328_v55  ;;  %v2284_v60 = vpack.c.bf16 %v1331_v59, %v1330_v58  ;;  %v1332_v61 = vld [vmem:[%s3398_s2 + $0xa0] sm:$0xff]  ;;  %v1333_v62 = vld [vmem:[%s3398_s2 + $0xa8] sm:$0xff]  ;;  %v1334_v0 = vld [vmem:[%s3398_s2 + $0xb0] sm:$0xff] }
  0x16   :  { %2243 = vmatpush3.bf16.msra.mxu0 %v2242_v32  ;;  %v2287_v63 = vpack.c.bf16 %v1333_v62, %v1332_v61  ;;  %v1335_v1 = vld [vmem:[%s3398_s2 + $0xb8] sm:$0xff]  ;;  %v1336_v5 = vld [vmem:[%s3398_s2 + $0xc0] sm:$0xff]  ;;  %v1337_v8 = vld [vmem:[%s3398_s2 + $0xc8] sm:$0xff] }
  0x17   :  { %2244 = vmatprep.subr.bf16.mxu0 %v2671_v3  ;;  %v2290_v2 = vpack.c.bf16 %v1335_v1, %v1334_v0  ;;  %v2293_v9 = vpack.c.bf16 %v1337_v8, %v1336_v5  ;;  %v1338_v10 = vld [vmem:[%s3398_s2 + $0xd0] sm:$0xff]  ;;  %v1339_v11 = vld [vmem:[%s3398_s2 + $0xd8] sm:$0xff]  ;;  %v1340_v13 = vld [vmem:[%s3398_s2 + $0xe0] sm:$0xff] }
  0x18   :  { %2273 = vmatpush3.bf16.msra.mxu1 %v2797_v36  ;;  %v2296_v12 = vpack.c.bf16 %v1339_v11, %v1338_v10  ;;  %v1341_v14 = vld [vmem:[%s3398_s2 + $0xe8] sm:$0xff]  ;;  %v1342_v17 = vld [vmem:[%s3398_s2 + $0xf0] sm:$0xff]  ;;  %v1343_v18 = vld [vmem:[%s3398_s2 + $0xf8] sm:$0xff] }
  0x19   :  { %2274 = vmatprep.subr.bf16.mxu1 %v2671_v3  ;;  %v2299_v15 = vpack.c.bf16 %v1341_v14, %v1340_v13  ;;  %v2302_v19 = vpack.c.bf16 %v1343_v18, %v1342_v17  ;;  %v1326_v20 = vld [vmem:[%s3396_s0 + $0x1] sm:$0x1]  ;;  %v1347_v30 = vld [vmem:[%s3398_s2 + $0x108] sm:$0xff]  ;;  %v1348_v33 = vld [vmem:[%s3398_s2 + $0x110] sm:$0xff] }
  0x1a   :  { %2246 = vmatpush3.bf16.msra.mxu0 %v2245_v40  ;;  %v1346_v28 = vld [vmem:[%s3398_s2 + $0x100] sm:$0xff]  ;;  %v1349_v34 = vld [vmem:[%s3398_s2 + $0x118] sm:$0xff]  ;;  %v1351_v38 = vld [vmem:[%s3398_s2 + $0x128] sm:$0xff] }
  0x1b   :  { %2247 = vmatprep.subr.bf16.mxu0 %v2671_v3  ;;  %v2329_v31 = vpack.c.bf16 %v1347_v30, %v1346_v28  ;;  %v2332_v35 = vpack.c.bf16 %v1349_v34, %v1348_v33  ;;  %v1350_v37 = vld [vmem:[%s3398_s2 + $0x120] sm:$0xff]  ;;  %v1352_v40 = vld [vmem:[%s3398_s2 + $0x130] sm:$0xff]  ;;  %v1353_v41 = vld [vmem:[%s3398_s2 + $0x138] sm:$0xff] }
  0x1c   :  { %2276 = vmatpush3.bf16.msra.mxu1 %v2814_v43  ;;  %v2335_v39 = vpack.c.bf16 %v1351_v38, %v1350_v37  ;;  %v2338_v42 = vpack.c.bf16 %v1353_v41, %v1352_v40  ;;  %v1354_v44 = vld [vmem:[%s3398_s2 + $0x140] sm:$0xff]  ;;  %v1355_v45 = vld [vmem:[%s3398_s2 + $0x148] sm:$0xff]  ;;  %v1356_v47 = vld [vmem:[%s3398_s2 + $0x150] sm:$0xff] }
  0x1d   :  { %2277 = vmatprep.subr.bf16.mxu1 %v2671_v3  ;;  %v2614_v53 = vpop.eup %2613  ;;  %v1357_v48 = vld [vmem:[%s3398_s2 + $0x158] sm:$0xff]  ;;  %v1358_v51 = vld [vmem:[%s3398_s2 + $0x160] sm:$0xff]  ;;  %v1359_v52 = vld [vmem:[%s3398_s2 + $0x168] sm:$0xff] }
  0x1e   :  { %2249 = vmatpush3.bf16.msra.mxu0 %v2248_v46  ;;  %v2341_v46 = vpack.c.bf16 %v1355_v45, %v1354_v44  ;;  %v1361_v55 = vld [vmem:[%s3398_s2 + $0x178] sm:$0xff]  ;;  %v1364_v0 = vld [vmem:[%s3398_s2 + $0x180] sm:$0xff]  ;;  %v1365_v1 = vld [vmem:[%s3398_s2 + $0x188] sm:$0xff] }
  0x1f   :  { %2250 = vmatprep.subr.bf16.mxu0 %v2671_v3  ;;  %v1366_v8 = vld [vmem:[%s3398_s2 + $0x190] sm:$0xff]  ;;  %v1368_v11 = vld [vmem:[%s3398_s2 + $0x1a0] sm:$0xff]  ;;  %v1379_v30 = vld [vmem:[%s3398_s2 + $0x1f8] sm:$0xff] }
  0x20   :  { %2279 = vmatpush3.bf16.msra.mxu1 %v2831_v49  ;;  %v1370_v14 = vld [vmem:[%s3398_s2 + $0x1b0] sm:$0xff]  ;;  %v1372_v18 = vld [vmem:[%s3398_s2 + $0x1c0] sm:$0xff]  ;;  %v1383_v41 = vld [vmem:[%s3398_s2 + $0x208] sm:$0xff] }
  0x21   :  { %2304 = vmatprep.subr.bf16.mxu1 %v2671_v3  ;;  %v1378_v28 = vld [vmem:[%s3398_s2 + $0x1f0] sm:$0xff]  ;;  %v1382_v40 = vld [vmem:[%s3398_s2 + $0x200] sm:$0xff] }
  0x22   :  { %2252 = vmatpush3.bf16.msra.mxu0 %v2251_v50  ;;  %v2344_v50 = vpack.c.bf16 %v1357_v48, %v1356_v47  ;;  %v1384_v45 = vld [vmem:[%s3398_s2 + $0x210] sm:$0xff]  ;;  %v1386_v48 = vld [vmem:[%s3398_s2 + $0x220] sm:$0xff] }
  0x23   :  { %1775 = vmatmul.mubr.f32.vlgmr.msra.gmra.mrb[0].mxu1 %v2614_v53  ;;  %2253 = vmatprep.subr.bf16.mxu0 %v2671_v3 }
  0x24   :  { %2306 = vmatpush3.bf16.msra.mxu1 %v2710_v4  ;;  %1844 = vmatprep.mubr.msk.f32.mxu1 %vm2672_vm0, %v2673_v6 }
  0x25   :  { %2307 = vmatprep.subr.bf16.mxu1 %v2671_v3 }
  0x26   :  { %2255 = vmatpush3.bf16.msra.mxu0 %v2254_v54  ;;  %v1360_v54 = vld [vmem:[%s3398_s2 + $0x170] sm:$0xff] }
  0x27   :  { %2280 = vmatprep.subr.bf16.mxu0 %v2671_v3  ;;  %v2350_v56 = vpack.c.bf16 %v1361_v55, %v1360_v54  ;;  %v1390_v55 = vld [vmem:[%s3398_s2 + $0x240] sm:$0xff] }
  0x28   :  { %2309 = vmatpush3.bf16.msra.mxu1 %v2721_v7 }
  0x29   :  { %1740 = vmatmul.mubr.f32.vlgmr.msra.gmra.mrb[0].mxu0 %v2614_v53  ;;  %2310 = vmatprep.subr.bf16.mxu1 %v2671_v3  ;;  %v2347_v53 = vpack.c.bf16 %v1359_v52, %v1358_v51  ;;  %v1388_v52 = vld [vmem:[%s3398_s2 + $0x230] sm:$0xff] }
  0x2a   :  { %2282 = vmatpush3.bf16.msra.mxu0 %v2281_v57  ;;  %1809 = vmatprep.mubr.msk.f32.mxu0 %vm2672_vm0, %v2673_v6  ;;  %v1344_v57 = vld [vmem:[%s3396_s0 + $0x2] sm:$0x1] }
  0x2b   :  { %2283 = vmatprep.subr.bf16.mxu0 %v2671_v3 }
  0x2c   :  { %2312 = vmatpush3.bf16.msra.mxu1 %v2746_v16 }
  0x2d   :  { %2313 = vmatprep.subr.bf16.mxu1 %v2671_v3 }
  0x2e   :  { %2285 = vmatpush3.bf16.msra.mxu0 %v2284_v60 }
  0x2f   :  { %2286 = vmatprep.subr.bf16.mxu0 %v2671_v3 }
  0x30   :  { %2315 = vmatpush3.bf16.msra.mxu1 %v2763_v23 }
  0x31   :  { %2316 = vmatprep.subr.bf16.mxu1 %v2671_v3 }
  0x32   :  { %2288 = vmatpush3.bf16.msra.mxu0 %v2287_v63 }
  0x33   :  { %2289 = vmatprep.subr.bf16.mxu0 %v2671_v3 }
  0x34   :  { %2318 = vmatpush3.bf16.msra.mxu1 %v2780_v29 }
  0x35   :  { %2319 = vmatprep.subr.bf16.mxu1 %v2671_v3 }
  0x36   :  { %2291 = vmatpush3.bf16.msra.mxu0 %v2290_v2  ;;  %v2377_v2 = vpack.c.bf16 %v1365_v1, %v1364_v0  ;;  %v1396_v0 = vld [vmem:[%s3398_s2 + $0x270] sm:$0xff]  ;;  %v1397_v1 = vld [vmem:[%s3398_s2 + $0x278] sm:$0xff] }
  0x37   :  { %2292 = vmatprep.subr.bf16.mxu0 %v2671_v3 }
  0x38   :  { %2321 = vmatpush3.bf16.msra.mxu1 %v2797_v36 }
  0x39   :  { %2322 = vmatprep.subr.bf16.mxu1 %v2671_v3 }
  0x3a   :  { %2294 = vmatpush3.bf16.msra.mxu0 %v2293_v9  ;;  %v1367_v9 = vld [vmem:[%s3398_s2 + $0x198] sm:$0xff] }
  0x3b   :  { %2295 = vmatprep.subr.bf16.mxu0 %v2671_v3  ;;  %v2380_v10 = vpack.c.bf16 %v1367_v9, %v1366_v8 }
  0x3c   :  { %2324 = vmatpush3.bf16.msra.mxu1 %v2814_v43 }
  0x3d   :  { %2325 = vmatprep.subr.bf16.mxu1 %v2671_v3 }
  0x3e   :  { %2297 = vmatpush3.bf16.msra.mxu0 %v2296_v12  ;;  %v1369_v12 = vld [vmem:[%s3398_s2 + $0x1a8] sm:$0xff] }
  0x3f   :  { %2298 = vmatprep.subr.bf16.mxu0 %v2671_v3  ;;  %v2383_v13 = vpack.c.bf16 %v1369_v12, %v1368_v11 }
  0x40   :  { %2327 = vmatpush3.bf16.msra.mxu1 %v2831_v49 }
  0x41   :  { %2352 = vmatprep.subr.bf16.mxu1 %v2671_v3 }
  0x42   :  { %2300 = vmatpush3.bf16.msra.mxu0 %v2299_v15  ;;  %v1371_v15 = vld [vmem:[%s3398_s2 + $0x1b8] sm:$0xff] }
  0x43   :  { %2301 = vmatprep.subr.bf16.mxu0 %v2671_v3  ;;  %v2386_v17 = vpack.c.bf16 %v1371_v15, %v1370_v14  ;;  %v1400_v14 = vld [vmem:[%s3398_s2 + $0x280] sm:$0xff]  ;;  %v1401_v15 = vld [vmem:[%s3398_s2 + $0x288] sm:$0xff] }
  0x46   :  { %2303 = vmatpush3.bf16.msra.mxu0 %v2302_v19  ;;  %v1373_v19 = vld [vmem:[%s3398_s2 + $0x1c8] sm:$0xff] }
  0x47   :  { %2328 = vmatprep.subr.bf16.mxu0 %v2671_v3 }
  0xf6   :  { %v197_v21 = vpop.f32.mrb[0].mxu1 }
  0xf7   :  { %v201_v22 = vadd.f32 %v1326_v20, %v197_v21  ;;  %v1776_v24 = vpop.f32.mrb[1].mxu1  ;;  %v2389_v20 = vpack.c.bf16 %v1373_v19, %v1372_v18  ;;  %v1374_v21 = vld [vmem:[%s3398_s2 + $0x1d0] sm:$0xff] }
  0xf8   :  { %v1402_v19 = vld [vmem:[%s3398_s2 + $0x290] sm:$0xff] }
  0xf9   :  { %v1327_v25 = vmul.f32 -1.442695, %v201_v22  ;;  %v1375_v22 = vld [vmem:[%s3398_s2 + $0x1d8] sm:$0xff] }
  0xfa   :  { %v2392_v24 = vpack.c.bf16 %v1375_v22, %v1374_v21  ;;  %v1404_v22 = vld [vmem:[%s3398_s2 + $0x2a0] sm:$0xff] }
  0xfb   :  { %2615 = vpow2.f32 %v1327_v25  ;;  %v1376_v25 = vld [vmem:[%s3398_s2 + $0x1e0] sm:$0xff] }
 0x105   :  { %v2616_v26 = vpop.eup %2615 }
 0x106   :  { %v205_v27 = vadd.f32 1.0, %v2616_v26  ;;  %v1377_v26 = vld [vmem:[%s3398_s2 + $0x1e8] sm:$0xff] }
 0x108   :  { %2617 = vrcp.f32 %v205_v27  ;;  %v2395_v27 = vpack.c.bf16 %v1377_v26, %v1376_v25  ;;  %v1406_v26 = vld [vmem:[%s3398_s2 + $0x2b0] sm:$0xff] }
 0x112   :  { %v2618_v32 = vpop.eup %2617 }
 0x113   :  { %1810 = vmatmul.mubr.f32.vlgmr.msra.gmra.mrb[0].mxu0 %v2618_v32  ;;  %1845 = vmatmul.mubr.f32.vlgmr.msra.gmra.mrb[2].mxu1 %v2618_v32  ;;  %v1362_v32 = vld [vmem:[%s3396_s0 + $0x3] sm:$0x1] }
 0x114   :  { %2330 = vmatpush3.bf16.msra.mxu0 %v2329_v31  ;;  %2354 = vmatpush3.bf16.msra.mxu1 %v2710_v4  ;;  %v2398_v31 = vpack.c.bf16 %v1379_v30, %v1378_v28  ;;  %v1408_v30 = vld [vmem:[%s3398_s2 + $0x2c0] sm:$0xff] }
 0x115   :  { %2331 = vmatprep.subr.bf16.mxu0 %v2671_v3  ;;  %2355 = vmatprep.subr.bf16.mxu1 %v2671_v3 }
 0x116   :  { %1879 = vmatprep.mubr.msk.f32.mxu0 %vm2672_vm0, %v2673_v6  ;;  %1914 = vmatprep.mubr.msk.f32.mxu1 %vm2672_vm0, %v2673_v6 }
 0x118   :  { %2357 = vmatpush3.bf16.msra.mxu1 %v2721_v7  ;;  %2333 = vmatpush3.bf16.msra.mxu0 %v2332_v35 }
 0x119   :  { %2358 = vmatprep.subr.bf16.mxu1 %v2671_v3  ;;  %2334 = vmatprep.subr.bf16.mxu0 %v2671_v3 }
 0x11c   :  { %2360 = vmatpush3.bf16.msra.mxu1 %v2746_v16  ;;  %2336 = vmatpush3.bf16.msra.mxu0 %v2335_v39 }
 0x11d   :  { %2361 = vmatprep.subr.bf16.mxu1 %v2671_v3  ;;  %2337 = vmatprep.subr.bf16.mxu0 %v2671_v3 }
 0x120   :  { %2363 = vmatpush3.bf16.msra.mxu1 %v2763_v23  ;;  %2339 = vmatpush3.bf16.msra.mxu0 %v2338_v42  ;;  %v2425_v42 = vpack.c.bf16 %v1383_v41, %v1382_v40  ;;  %v1414_v40 = vld [vmem:[%s3398_s2 + $0x2f0] sm:$0xff]  ;;  %v1415_v41 = vld [vmem:[%s3398_s2 + $0x2f8] sm:$0xff] }
 0x121   :  { %2364 = vmatprep.subr.bf16.mxu1 %v2671_v3  ;;  %2340 = vmatprep.subr.bf16.mxu0 %v2671_v3 }
 0x124   :  { %2366 = vmatpush3.bf16.msra.mxu1 %v2780_v29  ;;  %2342 = vmatpush3.bf16.msra.mxu0 %v2341_v46  ;;  %v1385_v46 = vld [vmem:[%s3398_s2 + $0x218] sm:$0xff] }
 0x125   :  { %2367 = vmatprep.subr.bf16.mxu1 %v2671_v3  ;;  %2343 = vmatprep.subr.bf16.mxu0 %v2671_v3  ;;  %v2428_v47 = vpack.c.bf16 %v1385_v46, %v1384_v45 }
 0x128   :  { %2369 = vmatpush3.bf16.msra.mxu1 %v2797_v36  ;;  %2345 = vmatpush3.bf16.msra.mxu0 %v2344_v50  ;;  %v1387_v50 = vld [vmem:[%s3398_s2 + $0x228] sm:$0xff] }
 0x129   :  { %2370 = vmatprep.subr.bf16.mxu1 %v2671_v3  ;;  %2346 = vmatprep.subr.bf16.mxu0 %v2671_v3  ;;  %v2431_v51 = vpack.c.bf16 %v1387_v50, %v1386_v48 }
 0x12c   :  { %2372 = vmatpush3.bf16.msra.mxu1 %v2814_v43  ;;  %2348 = vmatpush3.bf16.msra.mxu0 %v2347_v53  ;;  %v1389_v53 = vld [vmem:[%s3398_s2 + $0x238] sm:$0xff] }
 0x12d   :  { %2373 = vmatprep.subr.bf16.mxu1 %v2671_v3  ;;  %2349 = vmatprep.subr.bf16.mxu0 %v2671_v3  ;;  %v2434_v54 = vpack.c.bf16 %v1389_v53, %v1388_v52  ;;  %v1418_v52 = vld [vmem:[%s3398_s2 + $0x300] sm:$0xff]  ;;  %v1419_v53 = vld [vmem:[%s3398_s2 + $0x308] sm:$0xff] }
 0x130   :  { %2375 = vmatpush3.bf16.msra.mxu1 %v2831_v49  ;;  %2351 = vmatpush3.bf16.msra.mxu0 %v2350_v56  ;;  %v1391_v56 = vld [vmem:[%s3398_s2 + $0x248] sm:$0xff] }
 0x131   :  { %2400 = vmatprep.subr.bf16.mxu1 %v2671_v3  ;;  %2376 = vmatprep.subr.bf16.mxu0 %v2671_v3 }
 0x1e6   :  { %v364_v58 = vpop.f32.mrb[2].mxu1 }
 0x1e7   :  { %v368_v59 = vadd.f32 %v1344_v57, %v364_v58  ;;  %v1846_v60 = vpop.f32.mrb[3].mxu1  ;;  %v2437_v57 = vpack.c.bf16 %v1391_v56, %v1390_v55  ;;  %v1392_v58 = vld [vmem:[%s3398_s2 + $0x250] sm:$0xff] }
 0x1e9   :  { %v1345_v61 = vmul.f32 -1.442695, %v368_v59  ;;  %v1393_v59 = vld [vmem:[%s3398_s2 + $0x258] sm:$0xff] }
 0x1ea   :  { %v2440_v60 = vpack.c.bf16 %v1393_v59, %v1392_v58  ;;  %v1427_v58 = vld [vmem:[%s3398_s2 + $0x348] sm:$0xff] }
 0x1eb   :  { %2619 = vpow2.f32 %v1345_v61  ;;  %v1394_v61 = vld [vmem:[%s3398_s2 + $0x260] sm:$0xff] }
 0x1f5   :  { %v2620_v62 = vpop.eup %2619 }
 0x1f6   :  { %v372_v63 = vadd.f32 1.0, %v2620_v62  ;;  %v1395_v62 = vld [vmem:[%s3398_s2 + $0x268] sm:$0xff] }
 0x1f8   :  { %2621 = vrcp.f32 %v372_v63  ;;  %v2443_v63 = vpack.c.bf16 %v1395_v62, %v1394_v61  ;;  %v1429_v61 = vld [vmem:[%s3398_s2 + $0x358] sm:$0xff] }
 0x202   :  { %v2622_v5 = vpop.eup %2621 }
 0x203   :  { %1880 = vmatmul.mubr.f32.vlgmr.msra.gmra.mrb[0].mxu0 %v2622_v5  ;;  %1915 = vmatmul.mubr.f32.vlgmr.msra.gmra.mrb[4].mxu1 %v2622_v5  ;;  %v1380_v5 = vld [vmem:[%s3396_s0 + $0x4] sm:$0x1] }
 0x204   :  { %2378 = vmatpush3.bf16.msra.mxu0 %v2377_v2  ;;  %2402 = vmatpush3.bf16.msra.mxu1 %v2710_v4  ;;  %v2446_v2 = vpack.c.bf16 %v1397_v1, %v1396_v0  ;;  %v1431_v0 = vld [vmem:[%s3398_s2 + $0x368] sm:$0xff] }
 0x205   :  { %2379 = vmatprep.subr.bf16.mxu0 %v2671_v3  ;;  %2403 = vmatprep.subr.bf16.mxu1 %v2671_v3 }
 0x206   :  { %1949 = vmatprep.mubr.msk.f32.mxu0 %vm2672_vm0, %v2673_v6  ;;  %1984 = vmatprep.mubr.msk.f32.mxu1 %vm2672_vm0, %v2673_v6 }
 0x208   :  { %2405 = vmatpush3.bf16.msra.mxu1 %v2721_v7  ;;  %2381 = vmatpush3.bf16.msra.mxu0 %v2380_v10 }
 0x209   :  { %2406 = vmatprep.subr.bf16.mxu1 %v2671_v3  ;;  %2382 = vmatprep.subr.bf16.mxu0 %v2671_v3 }
 0x20c   :  { %2408 = vmatpush3.bf16.msra.mxu1 %v2746_v16  ;;  %2384 = vmatpush3.bf16.msra.mxu0 %v2383_v13 }
 0x20d   :  { %2409 = vmatprep.subr.bf16.mxu1 %v2671_v3  ;;  %2385 = vmatprep.subr.bf16.mxu0 %v2671_v3 }
 0x210   :  { %2411 = vmatpush3.bf16.msra.mxu1 %v2763_v23  ;;  %2387 = vmatpush3.bf16.msra.mxu0 %v2386_v17  ;;  %v2473_v17 = vpack.c.bf16 %v1401_v15, %v1400_v14 }
 0x211   :  { %2412 = vmatprep.subr.bf16.mxu1 %v2671_v3  ;;  %2388 = vmatprep.subr.bf16.mxu0 %v2671_v3 }
 0x214   :  { %2414 = vmatpush3.bf16.msra.mxu1 %v2780_v29  ;;  %2390 = vmatpush3.bf16.msra.mxu0 %v2389_v20  ;;  %v1403_v20 = vld [vmem:[%s3398_s2 + $0x298] sm:$0xff] }
 0x215   :  { %2415 = vmatprep.subr.bf16.mxu1 %v2671_v3  ;;  %2391 = vmatprep.subr.bf16.mxu0 %v2671_v3  ;;  %v2476_v21 = vpack.c.bf16 %v1403_v20, %v1402_v19 }
 0x218   :  { %2417 = vmatpush3.bf16.msra.mxu1 %v2797_v36  ;;  %2393 = vmatpush3.bf16.msra.mxu0 %v2392_v24  ;;  %v1405_v24 = vld [vmem:[%s3398_s2 + $0x2a8] sm:$0xff] }
 0x219   :  { %2418 = vmatprep.subr.bf16.mxu1 %v2671_v3  ;;  %2394 = vmatprep.subr.bf16.mxu0 %v2671_v3  ;;  %v2479_v25 = vpack.c.bf16 %v1405_v24, %v1404_v22  ;;  %v1439_v22 = vld [vmem:[%s3398_s2 + $0x398] sm:$0xff] }
 0x21c   :  { %2420 = vmatpush3.bf16.msra.mxu1 %v2814_v43  ;;  %2396 = vmatpush3.bf16.msra.mxu0 %v2395_v27  ;;  %v1407_v27 = vld [vmem:[%s3398_s2 + $0x2b8] sm:$0xff] }
 0x21d   :  { %2421 = vmatprep.subr.bf16.mxu1 %v2671_v3  ;;  %2397 = vmatprep.subr.bf16.mxu0 %v2671_v3  ;;  %v2482_v28 = vpack.c.bf16 %v1407_v27, %v1406_v26  ;;  %v1442_v27 = vld [vmem:[%s3398_s2 + $0x3b0] sm:$0xff] }
 0x220   :  { %2423 = vmatpush3.bf16.msra.mxu1 %v2831_v49  ;;  %2399 = vmatpush3.bf16.msra.mxu0 %v2398_v31  ;;  %v1409_v31 = vld [vmem:[%s3398_s2 + $0x2c8] sm:$0xff] }
 0x221   :  { %2448 = vmatprep.subr.bf16.mxu1 %v2671_v3  ;;  %2424 = vmatprep.subr.bf16.mxu0 %v2671_v3 }
 0x2d6   :  { %v531_v33 = vpop.f32.mrb[4].mxu1 }
 0x2d7   :  { %v535_v34 = vadd.f32 %v1362_v32, %v531_v33  ;;  %v1916_v35 = vpop.f32.mrb[5].mxu1  ;;  %v2485_v32 = vpack.c.bf16 %v1409_v31, %v1408_v30  ;;  %v1410_v33 = vld [vmem:[%s3398_s2 + $0x2d0] sm:$0xff]  ;;  %v1444_v31 = vld [vmem:[%s3398_s2 + $0x3c0] sm:$0xff] }
 0x2d9   :  { %v1363_v37 = vmul.f32 -1.442695, %v535_v34  ;;  %v1411_v34 = vld [vmem:[%s3398_s2 + $0x2d8] sm:$0xff] }
 0x2da   :  { %v2488_v35 = vpack.c.bf16 %v1411_v34, %v1410_v33  ;;  %v1446_v34 = vld [vmem:[%s3398_s2 + $0x3d0] sm:$0xff] }
 0x2db   :  { %2623 = vpow2.f32 %v1363_v37  ;;  %v1412_v37 = vld [vmem:[%s3398_s2 + $0x2e0] sm:$0xff] }
 0x2e5   :  { %v2624_v38 = vpop.eup %2623 }
 0x2e6   :  { %v539_v39 = vadd.f32 1.0, %v2624_v38  ;;  %v1413_v38 = vld [vmem:[%s3398_s2 + $0x2e8] sm:$0xff] }
 0x2e8   :  { %2625 = vrcp.f32 %v539_v39  ;;  %v2491_v39 = vpack.c.bf16 %v1413_v38, %v1412_v37  ;;  %v1448_v38 = vld [vmem:[%s3398_s2 + $0x3e0] sm:$0xff] }
 0x2f2   :  { %v2626_v44 = vpop.eup %2625 }
 0x2f3   :  { %1950 = vmatmul.mubr.f32.vlgmr.msra.gmra.mrb[0].mxu0 %v2626_v44  ;;  %1985 = vmatmul.mubr.f32.vlgmr.msra.gmra.mrb[6].mxu1 %v2626_v44  ;;  %v1398_v44 = vld [vmem:[%s3396_s0 + $0x5] sm:$0x1] }
 0x2f4   :  { %2426 = vmatpush3.bf16.msra.mxu0 %v2425_v42  ;;  %2450 = vmatpush3.bf16.msra.mxu1 %v2710_v4  ;;  %v2494_v42 = vpack.c.bf16 %v1415_v41, %v1414_v40  ;;  %v1450_v41 = vld [vmem:[%s3398_s2 + $0x3f0] sm:$0xff] }
 0x2f5   :  { %2427 = vmatprep.subr.bf16.mxu0 %v2671_v3  ;;  %2451 = vmatprep.subr.bf16.mxu1 %v2671_v3 }
 0x2f6   :  { %2019 = vmatprep.mubr.msk.f32.mxu0 %vm2672_vm0, %v2673_v6  ;;  %2054 = vmatprep.mubr.msk.f32.mxu1 %vm2672_vm0, %v2673_v6 }
 0x2f8   :  { %2453 = vmatpush3.bf16.msra.mxu1 %v2721_v7  ;;  %2429 = vmatpush3.bf16.msra.mxu0 %v2428_v47 }
 0x2f9   :  { %2454 = vmatprep.subr.bf16.mxu1 %v2671_v3  ;;  %2430 = vmatprep.subr.bf16.mxu0 %v2671_v3 }
 0x2fc   :  { %2456 = vmatpush3.bf16.msra.mxu1 %v2746_v16  ;;  %2432 = vmatpush3.bf16.msra.mxu0 %v2431_v51 }
 0x2fd   :  { %2457 = vmatprep.subr.bf16.mxu1 %v2671_v3  ;;  %2433 = vmatprep.subr.bf16.mxu0 %v2671_v3 }
 0x300   :  { %2459 = vmatpush3.bf16.msra.mxu1 %v2763_v23  ;;  %2435 = vmatpush3.bf16.msra.mxu0 %v2434_v54  ;;  %v2521_v54 = vpack.c.bf16 %v1419_v53, %v1418_v52 }
 0x301   :  { %2460 = vmatprep.subr.bf16.mxu1 %v2671_v3  ;;  %2436 = vmatprep.subr.bf16.mxu0 %v2671_v3 }
 0x304   :  { %2462 = vmatpush3.bf16.msra.mxu1 %v2780_v29  ;;  %2438 = vmatpush3.bf16.msra.mxu0 %v2437_v57  ;;  %v1426_v57 = vld [vmem:[%s3398_s2 + $0x340] sm:$0xff] }
 0x305   :  { %2463 = vmatprep.subr.bf16.mxu1 %v2671_v3  ;;  %2439 = vmatprep.subr.bf16.mxu0 %v2671_v3  ;;  %v2533_v59 = vpack.c.bf16 %v1427_v58, %v1426_v57 }
 0x308   :  { %2465 = vmatpush3.bf16.msra.mxu1 %v2797_v36  ;;  %2441 = vmatpush3.bf16.msra.mxu0 %v2440_v60  ;;  %v1428_v60 = vld [vmem:[%s3398_s2 + $0x350] sm:$0xff] }
 0x309   :  { %2466 = vmatprep.subr.bf16.mxu1 %v2671_v3  ;;  %2442 = vmatprep.subr.bf16.mxu0 %v2671_v3  ;;  %v2536_v62 = vpack.c.bf16 %v1429_v61, %v1428_v60 }
 0x30c   :  { %2468 = vmatpush3.bf16.msra.mxu1 %v2814_v43  ;;  %2444 = vmatpush3.bf16.msra.mxu0 %v2443_v63  ;;  %v1430_v63 = vld [vmem:[%s3398_s2 + $0x360] sm:$0xff] }
 0x30d   :  { %2469 = vmatprep.subr.bf16.mxu1 %v2671_v3  ;;  %2445 = vmatprep.subr.bf16.mxu0 %v2671_v3  ;;  %v2539_v1 = vpack.c.bf16 %v1431_v0, %v1430_v63 }
 0x310   :  { %2471 = vmatpush3.bf16.msra.mxu1 %v2831_v49  ;;  %2447 = vmatpush3.bf16.msra.mxu0 %v2446_v2  ;;  %v1432_v2 = vld [vmem:[%s3398_s2 + $0x370] sm:$0xff] }
 0x311   :  { %2496 = vmatprep.subr.bf16.mxu1 %v2671_v3  ;;  %2472 = vmatprep.subr.bf16.mxu0 %v2671_v3 }
 0x3c6   :  { %v698_v8 = vpop.f32.mrb[6].mxu1 }
 0x3c7   :  { %v702_v9 = vadd.f32 %v1380_v5, %v698_v8  ;;  %v1986_v10 = vpop.f32.mrb[7].mxu1  ;;  %v1433_v5 = vld [vmem:[%s3398_s2 + $0x378] sm:$0xff] }
 0x3c8   :  { %v2542_v8 = vpack.c.bf16 %v1433_v5, %v1432_v2 }
 0x3c9   :  { %v1381_v11 = vmul.f32 -1.442695, %v702_v9  ;;  %v1416_v9 = vld [vmem:[%s3396_s0 + $0x6] sm:$0x1] }
 0x3cb   :  { %2627 = vpow2.f32 %v1381_v11 }
 0x3d5   :  { %v2628_v12 = vpop.eup %2627 }
 0x3d6   :  { %v706_v13 = vadd.f32 1.0, %v2628_v12 }
 0x3d8   :  { %2629 = vrcp.f32 %v706_v13 }
 0x3e2   :  { %v2630_v18 = vpop.eup %2629 }
 0x3e3   :  { %2020 = vmatmul.mubr.f32.vlgmr.msra.gmra.mrb[0].mxu0 %v2630_v18  ;;  %2055 = vmatmul.mubr.f32.vlgmr.msra.gmra.mrb[8].mxu1 %v2630_v18  ;;  %v1437_v18 = vld [vmem:[%s3398_s2 + $0x388] sm:$0xff] }
 0x3e4   :  { %2474 = vmatpush3.bf16.msra.mxu0 %v2473_v17  ;;  %2498 = vmatpush3.bf16.msra.mxu1 %v2710_v4  ;;  %v1436_v17 = vld [vmem:[%s3398_s2 + $0x380] sm:$0xff] }
 0x3e5   :  { %2475 = vmatprep.subr.bf16.mxu0 %v2671_v3  ;;  %2499 = vmatprep.subr.bf16.mxu1 %v2671_v3  ;;  %v2569_v19 = vpack.c.bf16 %v1437_v18, %v1436_v17 }
 0x3e6   :  { %2089 = vmatprep.mubr.msk.f32.mxu0 %vm2672_vm0, %v2673_v6  ;;  %2124 = vmatprep.mubr.msk.f32.mxu1 %vm2672_vm0, %v2673_v6 }
 0x3e8   :  { %2501 = vmatpush3.bf16.msra.mxu1 %v2721_v7  ;;  %2477 = vmatpush3.bf16.msra.mxu0 %v2476_v21  ;;  %v1438_v21 = vld [vmem:[%s3398_s2 + $0x390] sm:$0xff] }
 0x3e9   :  { %2502 = vmatprep.subr.bf16.mxu1 %v2671_v3  ;;  %2478 = vmatprep.subr.bf16.mxu0 %v2671_v3  ;;  %v2572_v24 = vpack.c.bf16 %v1439_v22, %v1438_v21 }
 0x3ec   :  { %2504 = vmatpush3.bf16.msra.mxu1 %v2746_v16  ;;  %2480 = vmatpush3.bf16.msra.mxu0 %v2479_v25  ;;  %v1440_v25 = vld [vmem:[%s3398_s2 + $0x3a0] sm:$0xff] }
 0x3ed   :  { %2505 = vmatprep.subr.bf16.mxu1 %v2671_v3  ;;  %2481 = vmatprep.subr.bf16.mxu0 %v2671_v3 }
 0x3f0   :  { %2507 = vmatpush3.bf16.msra.mxu1 %v2763_v23  ;;  %2483 = vmatpush3.bf16.msra.mxu0 %v2482_v28  ;;  %v1443_v28 = vld [vmem:[%s3398_s2 + $0x3b8] sm:$0xff] }
 0x3f1   :  { %2508 = vmatprep.subr.bf16.mxu1 %v2671_v3  ;;  %2484 = vmatprep.subr.bf16.mxu0 %v2671_v3  ;;  %v2578_v30 = vpack.c.bf16 %v1443_v28, %v1442_v27 }
 0x3f4   :  { %2510 = vmatpush3.bf16.msra.mxu1 %v2780_v29  ;;  %2486 = vmatpush3.bf16.msra.mxu0 %v2485_v32  ;;  %v1445_v32 = vld [vmem:[%s3398_s2 + $0x3c8] sm:$0xff] }
 0x3f5   :  { %2511 = vmatprep.subr.bf16.mxu1 %v2671_v3  ;;  %2487 = vmatprep.subr.bf16.mxu0 %v2671_v3  ;;  %v2581_v33 = vpack.c.bf16 %v1445_v32, %v1444_v31 }
 0x3f8   :  { %2513 = vmatpush3.bf16.msra.mxu1 %v2797_v36  ;;  %2489 = vmatpush3.bf16.msra.mxu0 %v2488_v35  ;;  %v1447_v35 = vld [vmem:[%s3398_s2 + $0x3d8] sm:$0xff] }
 0x3f9   :  { %2514 = vmatprep.subr.bf16.mxu1 %v2671_v3  ;;  %2490 = vmatprep.subr.bf16.mxu0 %v2671_v3  ;;  %v2584_v37 = vpack.c.bf16 %v1447_v35, %v1446_v34 }
 0x3fc   :  { %2516 = vmatpush3.bf16.msra.mxu1 %v2814_v43  ;;  %2492 = vmatpush3.bf16.msra.mxu0 %v2491_v39  ;;  %v1449_v39 = vld [vmem:[%s3398_s2 + $0x3e8] sm:$0xff] }
 0x3fd   :  { %2517 = vmatprep.subr.bf16.mxu1 %v2671_v3  ;;  %2493 = vmatprep.subr.bf16.mxu0 %v2671_v3  ;;  %v2587_v40 = vpack.c.bf16 %v1449_v39, %v1448_v38 }
 0x400   :  { %2519 = vmatpush3.bf16.msra.mxu1 %v2831_v49  ;;  %2495 = vmatpush3.bf16.msra.mxu0 %v2494_v42  ;;  %v1451_v42 = vld [vmem:[%s3398_s2 + $0x3f8] sm:$0xff] }
 0x401   :  { %2544 = vmatprep.subr.bf16.mxu1 %v2671_v3  ;;  %2520 = vmatprep.subr.bf16.mxu0 %v2671_v3 }
 0x4b6   :  { %v865_v45 = vpop.f32.mrb[8].mxu1 }
 0x4b7   :  { %v869_v46 = vadd.f32 %v1398_v44, %v865_v45  ;;  %v2056_v47 = vpop.f32.mrb[9].mxu1  ;;  %v2590_v44 = vpack.c.bf16 %v1451_v42, %v1450_v41  ;;  %v1434_v45 = vld [vmem:[%s3396_s0 + $0x7] sm:$0x1]  ;;  %s2674_s0 = smov [#allocation2]  }
 0x4b8   :  { %s1317_s1 = sshll.u32 %s2674_s0, 4  ;;  %s1318_s1 = int_to_ptr.vmem [resolvable:$true] %s1317_s1 }
 0x4b9   :  { %v1399_v48 = vmul.f32 -1.442695, %v869_v46  ;;  %s2651_s25 = scalar_lea.vmem %s1318_s1, 32  ;;  %p2652_p1 = scmp.lt.s32.totalorder %s1318_s1, %s1318_s1 }
 0x4bb   :  { %2631 = vpow2.f32 %v1399_v48 }
 0x4c5   :  { %v2632_v50 = vpop.eup %2631 }
 0x4c6   :  { %v873_v51 = vadd.f32 1.0, %v2632_v50 }
 0x4c8   :  { %2633 = vrcp.f32 %v873_v51 }
 0x4d2   :  { %v2634_v55 = vpop.eup %2633 }
 0x4d3   :  { %2090 = vmatmul.mubr.f32.vlgmr.msra.gmra.mrb[0].mxu0 %v2634_v55  ;;  %2125 = vmatmul.mubr.f32.vlgmr.msra.gmra.mrb[10].mxu1 %v2634_v55 }
 0x4d4   :  { %2522 = vmatpush3.bf16.msra.mxu0 %v2521_v54  ;;  %2546 = vmatpush3.bf16.msra.mxu1 %v2710_v4  ;;  %v1420_v4 = vld [vmem:[%s3398_s2 + $0x310] sm:$0xff]  ;;  %v34_v54 = vld [vmem:[%s3399_s3] sm:$0x1]  ;;  %s2647_s3 = scalar_lea.vmem %s1318_s1, 16 }
 0x4d5   :  { %2523 = vmatprep.subr.bf16.mxu0 %v2671_v3  ;;  %2547 = vmatprep.subr.bf16.mxu1 %v2671_v3  ;;  %p2648_p0 = scmp.ne.s32.totalorder %s1318_s1, %s2647_s3  ;;  %p2653_p2 = scmp.lt.s32.totalorder %s2651_s25, %s2647_s3 }
 0x4d6   :  { %2159 = vmatprep.mubr.msk.f32.mxu0 %vm2672_vm0, %v2673_v6  ;;  %2194 = vmatprep.mubr.msk.f32.mxu1 %vm2672_vm0, %v2673_v6 }
 0x4d7   :  { %p2654_p3 = por %p2653_p2, %p2652_p1 }
 0x4d8   :  { %2549 = vmatpush3.bf16.msra.mxu1 %v2721_v7  ;;  %v1421_v7 = vld [vmem:[%s3398_s2 + $0x318] sm:$0xff] }
 0x4d9   :  { %2550 = vmatprep.subr.bf16.mxu1 %v2671_v3  ;;  %p2655_p4 = pnand %p2654_p3, %p2648_p0 }
 0x4dc   :  { %2552 = vmatpush3.bf16.msra.mxu1 %v2746_v16  ;;  %v2524_v16 = vpack.c.bf16 %v1421_v7, %v1420_v4 }
 0x4dd   :  { %2553 = vmatprep.subr.bf16.mxu1 %v2671_v3 }
 0x4de   :  { %2525 = vmatpush3.bf16.msra.mxu0 %v2524_v16 }
 0x4df   :  { %2526 = vmatprep.subr.bf16.mxu0 %v2671_v3 }
 0x4e0   :  { %2555 = vmatpush3.bf16.msra.mxu1 %v2763_v23  ;;  %v1422_v23 = vld [vmem:[%s3398_s2 + $0x320] sm:$0xff] }
 0x4e1   :  { %2556 = vmatprep.subr.bf16.mxu1 %v2671_v3 }
 0x4e4   :  { %2558 = vmatpush3.bf16.msra.mxu1 %v2780_v29  ;;  %v1423_v29 = vld [vmem:[%s3398_s2 + $0x328] sm:$0xff] }
 0x4e5   :  { %2559 = vmatprep.subr.bf16.mxu1 %v2671_v3 }
 0x4e8   :  { %2561 = vmatpush3.bf16.msra.mxu1 %v2797_v36  ;;  %v2527_v36 = vpack.c.bf16 %v1423_v29, %v1422_v23 }
 0x4e9   :  { %2562 = vmatprep.subr.bf16.mxu1 %v2671_v3 }
 0x4ea   :  { %2528 = vmatpush3.bf16.msra.mxu0 %v2527_v36 }
 0x4eb   :  { %2529 = vmatprep.subr.bf16.mxu0 %v2671_v3 }
 0x4ec   :  { %2564 = vmatpush3.bf16.msra.mxu1 %v2814_v43  ;;  %v1424_v43 = vld [vmem:[%s3398_s2 + $0x330] sm:$0xff] }
 0x4ed   :  { %2565 = vmatprep.subr.bf16.mxu1 %v2671_v3 }
 0x4f0   :  { %2567 = vmatpush3.bf16.msra.mxu1 %v2831_v49  ;;  %v1425_v49 = vld [vmem:[%s3398_s2 + $0x338] sm:$0xff] }
 0x4f1   :  { %v2530_v56 = vpack.c.bf16 %v1425_v49, %v1424_v43 }
 0x4f3   :  { %2531 = vmatpush3.bf16.msra.mxu0 %v2530_v56 }
 0x4f4   :  { %2532 = vmatprep.subr.bf16.mxu0 %v2671_v3 }
 0x4f7   :  { %2534 = vmatpush3.bf16.msra.mxu0 %v2533_v59 }
 0x4f8   :  { %2535 = vmatprep.subr.bf16.mxu0 %v2671_v3 }
 0x4fb   :  { %2537 = vmatpush3.bf16.msra.mxu0 %v2536_v62 }
 0x4fc   :  { %2538 = vmatprep.subr.bf16.mxu0 %v2671_v3 }
 0x4ff   :  { %2540 = vmatpush3.bf16.msra.mxu0 %v2539_v1 }
 0x500   :  { %2541 = vmatprep.subr.bf16.mxu0 %v2671_v3 }
 0x503   :  { %2543 = vmatpush3.bf16.msra.mxu0 %v2542_v8 }
 0x504   :  { %2568 = vmatprep.subr.bf16.mxu0 %v2671_v3 }
 0x5a6   :  { %v1032_v10 = vpop.f32.mrb[10].mxu1 }
 0x5a7   :  { %v1036_v11 = vadd.f32 %v1416_v9, %v1032_v10  ;;  %v2126_v12 = vpop.f32.mrb[11].mxu1 }
 0x5a9   :  { %v1417_v13 = vmul.f32 -1.442695, %v1036_v11 }
 0x5ab   :  { %2635 = vpow2.f32 %v1417_v13 }
 0x5b5   :  { %v2636_v14 = vpop.eup %2635 }
 0x5b6   :  { %v1040_v15 = vadd.f32 1.0, %v2636_v14 }
 0x5b8   :  { %2637 = vrcp.f32 %v1040_v15 }
 0x5c2   :  { %v2638_v20 = vpop.eup %2637 }
 0x5c3   :  { %2160 = vmatmul.mubr.f32.vlgmr.msra.gmra.mrb[0].mxu0 %v2638_v20  ;;  %2195 = vmatmul.mubr.f32.vlgmr.msra.gmra.mrb[12].mxu1 %v2638_v20 }
 0x5c4   :  { %2570 = vmatpush3.bf16.msra.mxu0 %v2569_v19  ;;  %2229 = vmatprep.mubr.msk.f32.mxu0 %vm2672_vm0, %v2673_v6  ;;  %v1441_v6 = vld [vmem:[%s3398_s2 + $0x3a8] sm:$0xff] }
 0x5c5   :  { %2571 = vmatprep.subr.bf16.mxu0 %v2671_v3  ;;  %v2575_v26 = vpack.c.bf16 %v1441_v6, %v1440_v25 }
 0x5c8   :  { %2573 = vmatpush3.bf16.msra.mxu0 %v2572_v24 }
 0x5c9   :  { %2574 = vmatprep.subr.bf16.mxu0 %v2671_v3 }
 0x5cc   :  { %2576 = vmatpush3.bf16.msra.mxu0 %v2575_v26 }
 0x5cd   :  { %2577 = vmatprep.subr.bf16.mxu0 %v2671_v3 }
 0x5d0   :  { %2579 = vmatpush3.bf16.msra.mxu0 %v2578_v30 }
 0x5d1   :  { %2580 = vmatprep.subr.bf16.mxu0 %v2671_v3 }
 0x5d4   :  { %2582 = vmatpush3.bf16.msra.mxu0 %v2581_v33 }
 0x5d5   :  { %2583 = vmatprep.subr.bf16.mxu0 %v2671_v3 }
 0x5d8   :  { %2585 = vmatpush3.bf16.msra.mxu0 %v2584_v37 }
 0x5d9   :  { %2586 = vmatprep.subr.bf16.mxu0 %v2671_v3 }
 0x5dc   :  { %2588 = vmatpush3.bf16.msra.mxu0 %v2587_v40 }
 0x5dd   :  { %2589 = vmatprep.subr.bf16.mxu0 %v2671_v3 }
 0x5e0   :  { %2591 = vmatpush3.bf16.msra.mxu0 %v2590_v44 }
 0x696   :  { %v1199_v46 = vpop.f32.mrb[12].mxu1 }
 0x697   :  { %v1203_v47 = vadd.f32 %v1434_v45, %v1199_v46  ;;  %v2196_v48 = vpop.f32.mrb[13].mxu1 }
 0x699   :  { %v1435_v50 = vmul.f32 -1.442695, %v1203_v47 }
 0x69b   :  { %2639 = vpow2.f32 %v1435_v50 }
 0x6a5   :  { %v2640_v51 = vpop.eup %2639 }
 0x6a6   :  { %v1207_v52 = vadd.f32 1.0, %v2640_v51 }
 0x6a8   :  { %2641 = vrcp.f32 %v1207_v52 }
 0x6b2   :  { %v2642_v53 = vpop.eup %2641 }
 0x6b3   :  { %2230 = vmatmul.mubr.f32.vlgmr.msra.gmra.mrb[0].mxu0 %v2642_v53 }
 0x786   :  { %v1293_v3 = vpop.f32.mrb[0].mxu0 }
 0x787   :  { %v2592_v55 = vadd.f32 %v1293_v3, %v34_v54  ;;  %v2231_v4 = vpop.f32.mrb[1].mxu0 }
 0x789   :  { %v1299_v7 = vsel %vm1298_vm1, %v2592_v55, -inf }
 0x78a   :  { %1300 = vmax.xlane.f32.xlu0 %v1299_v7 }
 0x817   :  { %v1301_v16 = vpop.xlane.xlu0 %1300 }
 0x818   :  { %v1302_v23 = vsub.f32 %v2592_v55, %v1301_v16 }
 0x81a   :  { %v1303_v29 = vmul.f32 1.442695, %v1302_v23 }
 0x81c   :  { %2643 = vpow2.f32 %v1303_v29 }
 0x826   :  { %v2644_v36 = vpop.eup %2643 }
 0x827   :  { %v1305_v43 = vsel %vm1298_vm1, %v2644_v36, 0.0 }
 0x828   :  { %1306 = vadd.xlane.f32.xlu0 %v1305_v43 }
 0x8b5   :  { %v1307_v49 = vpop.xlane.xlu0 %1306 }
 0x8b6   :  { %2645 = vrcp.f32 %v1307_v49 }
 0x8c0   :  { %v2646_v56 = vpop.eup %2645 }
 0x8c1   :  { %v1309_v57 = vmul.f32 %v2646_v56, %v2644_v36 }
 0x8c3   :  { %1310 = vst.msk [vmem:[#allocation2] sm:$0x1] %vm1298_vm1, %v1309_v57 }
 0x8c4   :  { %2658 = shalt.err (!%p2655_p4)
}
 0x8c5   :  { %s2659_s28 = scalar_lea.hbm %s3400_s4, 16 }
 0x8c6   :  { %p2660_p5 = scmp.ne.s32.totalorder %s3400_s4, %s2659_s28  ;;  %p2663_p6 = scmp.lt.u32.totalorder %s2659_s28, %s3400_s4 }
 0x8c8   :  { %p2665_p7 = pnand %p2663_p6, %p2660_p5 }
 0x8ca   :  { %2668 = shalt.err (!%p2665_p7)
}
 0x8cb   :  { %1320 = dma.vmem_to_hbm [thread:$0]  %s1318_s1, 16, %s3400_s4, [#allocation3]  }
 0x8cc   :  { %2669 = dma.done.wait [#allocation3], 16  }
 0x8cd   :  { %2670 = vsyncadd [#allocation3], 4294967280 }
 0x8ce   :  { %1324 = vsyncpa [#allocation3], 1 }

</bundles_post_ra>
